<compile_context>
chip_gen: v7x
topology: tpu7x:2x2x1
jax: 0.10.0
libtpu: 0.0.40
codegen_flags: <defaults>
</compile_context>

<pallas_src>
import functools
import math

import numpy as np
import jax
import jax.numpy as jnp
from jax.experimental import pallas as pl
from jax.experimental.pallas import tpu as pltpu


# ---------------------------------------------------------------------------
# Linear layer:  y = x @ W^T + b   (row-blocked matmul, weights VMEM-resident)
# ---------------------------------------------------------------------------
def _linear_kernel(x_ref, wt_ref, b_ref, o_ref):
    # x_ref: (TM, IN)   wt_ref: (IN, OUT)  (pre-transposed W)   b_ref: (1, OUT)
    o_ref[...] = (
        jnp.dot(x_ref[...], wt_ref[...], preferred_element_type=jnp.float32)
        + b_ref[...]
    ).astype(o_ref.dtype)


def linear(x2d, w, b, *, block_rows=512):
    """x2d: (M, IN);  w: (OUT, IN) torch nn.Linear layout;  b: (OUT,) -> (M, OUT)."""
    M, IN = x2d.shape
    OUT = w.shape[0]
    wt = w.T                      # (IN, OUT): output dim on lanes (lane-dense)
    b2 = b.reshape(1, OUT)
    tm = M if M <= block_rows else block_rows
    grid = (pl.cdiv(M, tm),)

    flops = 2 * M * IN * OUT
    bytes_accessed = 4 * (M * IN + IN * OUT + OUT + M * OUT)

    return pl.pallas_call(
        _linear_kernel,
        out_shape=jax.ShapeDtypeStruct((M, OUT), x2d.dtype),
        grid_spec=pltpu.PrefetchScalarGridSpec(
            num_scalar_prefetch=0,
            grid=grid,
            in_specs=[
                pl.BlockSpec((tm, IN), lambda i: (i, 0)),    # row block of x
                pl.BlockSpec((IN, OUT), lambda i: (0, 0)),   # W^T resident in VMEM
                pl.BlockSpec((1, OUT), lambda i: (0, 0)),    # bias resident in VMEM
            ],
            out_specs=pl.BlockSpec((tm, OUT), lambda i: (i, 0)),
        ),
        compiler_params=pltpu.CompilerParams(
            dimension_semantics=("parallel",)),
        cost_estimate=pl.CostEstimate(
            flops=int(flops), transcendentals=0,
            bytes_accessed=int(bytes_accessed)),
    )(x2d, wt, b2)


# ---------------------------------------------------------------------------
# Scaled dot-product attention over all heads of one batch element per step.
# ---------------------------------------------------------------------------
def _attention_kernel(q_ref, k_ref, v_ref, o_ref, *, scale):
    q = q_ref[0]                                   # (H, S, Dh)
    k = k_ref[0]
    v = v_ref[0]
    s = jnp.einsum("hqd,hkd->hqk", q, k,
                   preferred_element_type=jnp.float32) * scale
    s_max = jnp.max(s, axis=-1, keepdims=True)
    p = jnp.exp(s - s_max)
    w = p / jnp.sum(p, axis=-1, keepdims=True)
    o_ref[0] = jnp.einsum("hqk,hkd->hqd", w, v,
                          preferred_element_type=jnp.float32).astype(o_ref.dtype)


def _attention_kernel_masked(q_ref, k_ref, v_ref, m_ref, o_ref, *, scale):
    q = q_ref[0]                                   # (H, S, Dh)
    k = k_ref[0]
    v = v_ref[0]
    mask = m_ref[0]                                # (H, S, S) float 0/1
    s = jnp.einsum("hqd,hkd->hqk", q, k,
                   preferred_element_type=jnp.float32) * scale
    s = s * mask - 1e4 * (1.0 - mask)              # matches torch: s*mask - 10**4*(1-mask)
    s_max = jnp.max(s, axis=-1, keepdims=True)
    p = jnp.exp(s - s_max)
    w = p / jnp.sum(p, axis=-1, keepdims=True)
    o_ref[0] = jnp.einsum("hqk,hkd->hqd", w, v,
                          preferred_element_type=jnp.float32).astype(o_ref.dtype)


def attention(qh, kh, vh, mask=None):
    """qh/kh/vh: (B, H, S, Dh); mask: (B, H, S, S) or None -> (B, H, S, Dh)."""
    B, H, S, D = qh.shape
    scale = 1.0 / math.sqrt(D)

    def blk(last):
        return pl.BlockSpec((1, H, S, last), lambda b: (b, 0, 0, 0))

    flops = 2 * (2 * B * H * S * S * D)
    bytes_accessed = 4 * (4 * B * H * S * D)
    if mask is None:
        kernel = functools.partial(_attention_kernel, scale=scale)
        in_specs = [blk(D), blk(D), blk(D)]
        args = (qh, kh, vh)
    else:
        kernel = functools.partial(_attention_kernel_masked, scale=scale)
        in_specs = [blk(D), blk(D), blk(D), blk(S)]
        args = (qh, kh, vh, mask.astype(jnp.float32))
        bytes_accessed += 4 * B * H * S * S

    return pl.pallas_call(
        kernel,
        out_shape=jax.ShapeDtypeStruct((B, H, S, D), qh.dtype),
        grid_spec=pltpu.PrefetchScalarGridSpec(
            num_scalar_prefetch=0,
            grid=(B,),
            in_specs=in_specs,
            out_specs=blk(D),
        ),
        compiler_params=pltpu.CompilerParams(
            dimension_semantics=("parallel",)),
        cost_estimate=pl.CostEstimate(
            flops=int(flops), transcendentals=int(B * H * S * S),
            bytes_accessed=int(bytes_accessed)),
    )(*args)


# ---------------------------------------------------------------------------
# Full MultiHeadAttention forward.
# ---------------------------------------------------------------------------
def multi_head_attention(queries, keys, values, params, num_heads, head_size,
                         mask=None):
    """queries/keys/values: (B, S, num_heads*head_size) -> (B, S, num_heads*head_size)."""
    B, S, E = queries.shape
    assert E == num_heads * head_size

    def split_heads(t):   # (B, S, E) -> (B, H, S, Dh)
        return t.reshape(B, S, num_heads, head_size).transpose(0, 2, 1, 3)

    def merge_heads(t):   # (B, H, S, Dh) -> (B, S, E)
        return t.transpose(0, 2, 1, 3).reshape(B, S, E)

    q = linear(queries.reshape(B * S, E), params["w_q"], params["b_q"]).reshape(B, S, E)
    k = linear(keys.reshape(B * S, E), params["w_k"], params["b_k"]).reshape(B, S, E)
    v = linear(values.reshape(B * S, E), params["w_v"], params["b_v"]).reshape(B, S, E)

    y = attention(split_heads(q), split_heads(k), split_heads(v), mask=mask)
    y = merge_heads(y)

    return linear(y.reshape(B * S, E), params["w_y"], params["b_y"]).reshape(B, S, E)


# ---------------------------------------------------------------------------
if __name__ == "__main__":
    B, S = 2, 8          # batch, sequence length
    H, Dh = 4, 8         # num_heads, head_size
    E = H * Dh           # hidden = 32

    key = jax.random.PRNGKey(0)
    ks = jax.random.split(key, 11)

    def linear_init(kw, kb, fan_in, fan_out):
        bound = 1.0 / math.sqrt(fan_in)     # torch nn.Linear default init
        w = jax.random.uniform(kw, (fan_out, fan_in), jnp.float32, -bound, bound)
        b = jax.random.uniform(kb, (fan_out,), jnp.float32, -bound, bound)
        return w, b

    w_q, b_q = linear_init(ks[0], ks[1], E, E)
    w_k, b_k = linear_init(ks[2], ks[3], E, E)
    w_v, b_v = linear_init(ks[4], ks[5], E, E)
    w_y, b_y = linear_init(ks[6], ks[7], E, E)
    params = dict(w_q=w_q, b_q=b_q, w_k=w_k, b_k=b_k,
                  w_v=w_v, b_v=b_v, w_y=w_y, b_y=b_y)

    queries = jax.random.normal(ks[8], (B, S, E), jnp.float32)
    keys_in = jax.random.normal(ks[9], (B, S, E), jnp.float32)
    values_in = jax.random.normal(ks[10], (B, S, E), jnp.float32)

    causal = jnp.tril(jnp.ones((S, S), jnp.float32))
    mask = jnp.broadcast_to(causal, (B, H, S, S))

    out_nomask = jax.block_until_ready(
        multi_head_attention(queries, keys_in, values_in, params, H, Dh))
    out_masked = jax.block_until_ready(
        multi_head_attention(queries, keys_in, values_in, params, H, Dh, mask=mask))

    # ---- float64 numpy reference (same math as the PyTorch module) ----------
    def ref_mha(q, k, v, m=None):
        qn, kn, vn = (np.asarray(t, np.float64) for t in (q, k, v))

        def lin(x, w, b):
            return x @ np.asarray(w, np.float64).T + np.asarray(b, np.float64)

        def split(t):
            return t.reshape(B, S, H, Dh).transpose(0, 2, 1, 3)

        Q, K, V = split(lin(qn, w_q, b_q)), split(lin(kn, w_k, b_k)), split(lin(vn, w_v, b_v))
        s = Q @ K.transpose(0, 1, 3, 2) / np.sqrt(Dh)
        if m is not None:
            mf = np.asarray(m, np.float64)
            s = s * mf - 1e4 * (1.0 - mf)
        s = s - s.max(axis=-1, keepdims=True)
        p = np.exp(s)
        w = p / p.sum(axis=-1, keepdims=True)
        y = (w @ V).transpose(0, 2, 1, 3).reshape(B, S, E)
        return lin(y, w_y, b_y)

    np.testing.assert_allclose(np.asarray(out_nomask),
                               ref_mha(queries, keys_in, values_in),
                               rtol=2e-2, atol=2e-2)
    np.testing.assert_allclose(np.asarray(out_masked),
                               ref_mha(queries, keys_in, values_in, mask),
                               rtol=2e-2, atol=2e-2)
    assert out_nomask.shape == (B, S, E)
    print("KERNEL_OK")
</pallas_src>

<mosaic_0001>
module attributes {stable_mosaic.version = 11 : i64} {
  func.func @_linear_kernel(%arg0: i32, %arg1: memref<16x32xf32, #tpu.memory_space<vmem>>, %arg2: memref<32x32xf32, #tpu.memory_space<vmem>>, %arg3: memref<1x32xf32, #tpu.memory_space<vmem>>, %arg4: memref<16x32xf32, #tpu.memory_space<vmem>>) attributes {dimension_semantics = [#tpu.dimension_semantics<parallel>], iteration_bounds = array<i64: 1>, scalar_prefetch = 0 : i64, scratch_operands = 0 : i64, tpu.core_type = #tpu.core_type<tc>, window_params = [{transform_indices = @transform_0, window_bounds = array<i64: 16, 32>}, {pipeline_mode = #tpu.pipeline_mode<synchronous>, transform_indices = @transform_1, window_bounds = array<i64: 32, 32>}, {pipeline_mode = #tpu.pipeline_mode<synchronous>, transform_indices = @transform_2, window_bounds = array<i64: 1, 32>}, {transform_indices = @transform_3, window_bounds = array<i64: 16, 32>}]} {
    %c0 = arith.constant 0 : index
    %c0_0 = arith.constant 0 : index
    %0 = vector.load %arg1[%c0, %c0_0] : memref<16x32xf32, #tpu.memory_space<vmem>>, vector<16x32xf32>
    %c0_1 = arith.constant 0 : index
    %c0_2 = arith.constant 0 : index
    %1 = vector.load %arg2[%c0_1, %c0_2] : memref<32x32xf32, #tpu.memory_space<vmem>>, vector<32x32xf32>
    %cst = arith.constant dense<0.000000e+00> : vector<16x32xf32>
    %2 = tpu.matmul %0, %1, %cst {dimension_numbers = #tpu.dot_dimension_numbers<[1], [0], [0], [1], [0, 0, 1, 1], [], []>} : vector<16x32xf32>, vector<32x32xf32>, vector<16x32xf32> -> vector<16x32xf32>
    %c0_3 = arith.constant 0 : index
    %c0_4 = arith.constant 0 : index
    %3 = vector.load %arg3[%c0_3, %c0_4] : memref<1x32xf32, #tpu.memory_space<vmem>>, vector<1x32xf32>
    %4 = vector.broadcast %3 : vector<1x32xf32> to vector<16x32xf32>
    %5 = arith.addf %2, %4 : vector<16x32xf32>
    %c0_5 = arith.constant 0 : index
    %c0_6 = arith.constant 0 : index
    %6 = vector.load %arg4[%c0_5, %c0_6] : memref<16x32xf32, #tpu.memory_space<vmem>>, vector<16x32xf32>
    tpu.vector_store %arg4[%c0_5, %c0_6], %5 {strides = array<i32>} : memref<16x32xf32, #tpu.memory_space<vmem>>, vector<16x32xf32>,
    return
  }
  func.func @transform_0(%arg0: i32) -> (i32, i32) {
    %c0_i32 = arith.constant 0 : i32
    %c0_i32_0 = arith.constant 0 : i32
    return %arg0, %c0_i32 : i32, i32
  }
  func.func @transform_1(%arg0: i32) -> (i32, i32) {
    %c0_i32 = arith.constant 0 : i32
    %c0_i32_0 = arith.constant 0 : i32
    %c0_i32_1 = arith.constant 0 : i32
    return %c0_i32, %c0_i32_0 : i32, i32
  }
  func.func @transform_2(%arg0: i32) -> (i32, i32) {
    %c0_i32 = arith.constant 0 : i32
    %c0_i32_0 = arith.constant 0 : i32
    %c0_i32_1 = arith.constant 0 : i32
    return %c0_i32, %c0_i32_0 : i32, i32
  }
  func.func @transform_3(%arg0: i32) -> (i32, i32) {
    %c0_i32 = arith.constant 0 : i32
    %c0_i32_0 = arith.constant 0 : i32
    return %arg0, %c0_i32 : i32, i32
  }
}

</mosaic_0001>

<bundles_post_ra>
// kernel: tpu_custom_call.1
= control target key start
LH: loop header
LB: loop body
LE: loop exit
PB: predicated region body
PF: predicated region fallthrough
CT: control target
= control target key end

     0   :  { %8 = vsyncpa [#allocation3], 0  ;;  %s340_s0 = inlined_call_operand.hbm [shape: f32[16,32], index: 0, kind: input, shape index: {}]   ;;  %s341_s1 = inlined_call_operand.hbm [shape: f32[32,32], index: 1, kind: input, shape index: {}]   ;;  %s342_s2 = inlined_call_operand.vmem [shape: f32[1,32], index: 2, kind: input, shape index: {}]   ;;  %s343_s3 = inlined_call_operand.hbm [shape: f32[16,32], index: 3, kind: output, shape index: {}]  }
   0x1   :  { %9 = vsyncpa [#allocation6], 0 }
   0x2   :  { %10 = vsyncpa [#allocation4], 0  ;;  %s263_s12 = smov [#allocation2]   ;;  %s191_s16 = scalar_lea.hbm %s340_s0, 256 }
   0x3   :  { %s16_s13 = sshll.u32 %s263_s12, 4  ;;  %p192_p0 = scmp.ne.s32.totalorder %s340_s0, %s191_s16  ;;  %s17_s13 = int_to_ptr.vmem [resolvable:$true] %s16_s13 }
   0x4   :  { %p195_p1 = scmp.lt.u32.totalorder %s191_s16, %s340_s0 }
   0x6   :  { %p197_p2 = pnand %p195_p1, %p192_p0 }
   0x8   :  { %200 = shalt.err (!%p197_p2)
}
   0x9   :  { %s201_s21 = scalar_lea.vmem %s17_s13, 256  ;;  %p206_p4 = scmp.lt.s32.totalorder %s17_s13, %s17_s13 }
   0xa   :  { %p202_p3 = scmp.ne.s32.totalorder %s17_s13, %s201_s21  ;;  %p207_p5 = scmp.lt.s32.totalorder %s201_s21, %s201_s21 }
   0xc   :  { %p208_p6 = por %p207_p5, %p206_p4 }
   0xe   :  { %p209_p7 = pnand %p208_p6, %p202_p3 }
  0x10   :  { %212 = shalt.err (!%p209_p7)
}
  0x11   :  { %s264_s22 = smov 128   ;;  %s265_s23 = smov 8  }
  0x12   :  { %22 = dma.hbm_to_vmem [thread:$0]  %s340_s0, 256, %s17_s13, [#allocation3], %s264_s22, %s264_s22, %s265_s23  }
  0x13   :  { %s266_s26 = smov [#allocation5]   ;;  %s213_s30 = scalar_lea.hbm %s341_s1, 512 }
  0x14   :  { %s28_s27 = sshll.u32 %s266_s26, 4  ;;  %p214_p8 = scmp.ne.s32.totalorder %s341_s1, %s213_s30  ;;  %s29_s27 = int_to_ptr.vmem [resolvable:$true] %s28_s27 }
  0x15   :  { %p217_p9 = scmp.lt.u32.totalorder %s213_s30, %s341_s1 }
  0x17   :  { %p219_p10 = pnand %p217_p9, %p214_p8 }
  0x19   :  { %222 = shalt.err (!%p219_p10)
}
  0x1a   :  { %s223_s8 = scalar_lea.vmem %s29_s27, 512  ;;  %p228_p12 = scmp.lt.s32.totalorder %s29_s27, %s29_s27 }
  0x1b   :  { %p224_p11 = scmp.ne.s32.totalorder %s29_s27, %s223_s8  ;;  %p229_p13 = scmp.lt.s32.totalorder %s223_s8, %s223_s8 }
  0x1d   :  { %p230_p0 = por %p229_p13, %p228_p12 }
  0x1f   :  { %p231_p1 = pnand %p230_p0, %p224_p11 }
  0x21   :  { %234 = shalt.err (!%p231_p1)
}
  0x22   :  { %34 = dma.hbm_to_vmem [thread:$0]  %s341_s1, 512, %s29_s27, [#allocation6], %s264_s22, %s264_s22, %s265_s23  }
  0x23   :  { %257 = dma.done.wait [#allocation3], 256  }
  0x24   :  { %258 = vsyncadd [#allocation3], 4294967040 }
  0x25   :  { %259 = dma.done.wait [#allocation6], 512  }
  0x26   :  { %260 = vsyncadd [#allocation6], 4294966784  ;;  %vm56_vm0 = vcmask 261120   ;;  %v45_v0 = vld [vmem:[#allocation5] sm:$0xff]  ;;  %v46_v1 = vld [vmem:[#allocation5 + $0x8] sm:$0xff]  ;;  %s267_s11 = smov [#allocation7]  }
  0x27   :  { %v47_v2 = vld [vmem:[#allocation5 + $0x10] sm:$0xff]  ;;  %v178_v3 = vpack.c.bf16 %v46_v1, %v45_v0  ;;  %v48_v4 = vld [vmem:[#allocation5 + $0x18] sm:$0xff]  ;;  %s145_s12 = sshll.u32 %s267_s11, 4  ;;  %s146_s12 = int_to_ptr.vmem [resolvable:$true] %s145_s12 }
  0x28   :  { %v43_v5 = vld [vmem:[#allocation2] sm:$0xff]  ;;  %v182_v6 = vpack.c.bf16 %v48_v4, %v47_v2  ;;  %v44_v7 = vld [vmem:[#allocation2 + $0x8] sm:$0xff]  ;;  %s235_s13 = scalar_lea.vmem %s146_s12, 256  ;;  %p240_p3 = scmp.lt.s32.totalorder %s146_s12, %s146_s12 }
  0x29   :  { %175 = vmatprep.mubr.msk.f32.mxu0 %vm56_vm0, %v43_v5  ;;  %179 = vmatprep.subr.bf16.mxu0 %v178_v3  ;;  %v158_v8 = vld [vmem:[%s342_s2] ss:$0 sm:$0xff]  ;;  %p236_p2 = scmp.ne.s32.totalorder %s146_s12, %s235_s13  ;;  %p241_p4 = scmp.lt.s32.totalorder %s235_s13, %s235_s13 }
  0x2a   :  { %181 = vmatpush3.bf16.msra.mxu0 %v178_v3 }
  0x2b   :  { %183 = vmatprep.subr.bf16.mxu0 %v182_v6  ;;  %p242_p5 = por %p241_p4, %p240_p3 }
  0x2d   :  { %p243_p6 = pnand %p242_p5, %p236_p2 }
  0x2e   :  { %185 = vmatpush3.bf16.msra.mxu0 %v182_v6 }
  0x31   :  { %176 = vmatmul.mubr.msk.f32.vlgmr.msra.gmra.mrb[0].mxu0 %vm56_vm0, %v44_v7 }
 0x104   :  { %v177_v9 = vpop.f32.mrb[0].mxu0 }
 0x105   :  { %v135_v10 = vadd.f32 %v177_v9, %v158_v8  ;;  %v129_v11 = vpop.f32.mrb[1].mxu0 }
 0x106   :  { %v130_v12 = vadd.f32 %v158_v8, %v129_v11 }
 0x107   :  { %139 = vst.msk [vmem:[#allocation7 + $0x8] sm:$0xff] %vm56_vm0, %v135_v10 }
 0x108   :  { %138 = vst.msk [vmem:[#allocation7] sm:$0xff] %vm56_vm0, %v130_v12 }
 0x109   :  { %246 = shalt.err (!%p243_p6)
}
 0x10a   :  { %s247_s15 = scalar_lea.hbm %s343_s3, 256 }
 0x10b   :  { %p248_p7 = scmp.ne.s32.totalorder %s343_s3, %s247_s15  ;;  %p251_p8 = scmp.lt.u32.totalorder %s247_s15, %s343_s3 }
 0x10d   :  { %p253_p9 = pnand %p251_p8, %p248_p7 }
 0x10f   :  { %256 = shalt.err (!%p253_p9)
}
 0x110   :  { %151 = dma.vmem_to_hbm [thread:$0]  %s146_s12, 256, %s343_s3, [#allocation4], %s264_s22, %s264_s22, %s265_s23  }
 0x111   :  { %261 = dma.done.wait [#allocation4], 256  }
 0x112   :  { %262 = vsyncadd [#allocation4], 4294967040 }
 0x113   :  { %155 = vsyncpa [#allocation3], 1 }
 0x114   :  { %156 = vsyncpa [#allocation6], 1 }
 0x115   :  { %157 = vsyncpa [#allocation4], 1 }

</bundles_post_ra>
